<compile_context>
chip_gen: v7x
topology: tpu7x:2x2x1
jax: 0.10.0
libtpu: 0.0.40
codegen_flags: <defaults>
</compile_context>

<pallas_src>
import jax
import jax.numpy as jnp
from jax.experimental import pallas as pl
from jax.experimental.pallas import tpu as pltpu


def _round_up(x, m):
    return (x + m - 1) // m * m


def _pick_tile(n_pad, preferred):
    for t in preferred:
        if n_pad % t == 0:
            return t
    return 128


def _make_lightgcn_kernel(inv_denom, tk):
    """Builds the kernel; `inv_denom` and the K tile size are Python constants."""

    def kernel(a_ref, e0_ref, out_ref, emb_buf, sum_ref, acc_ref):
        # a_ref  : (TM, TK)     bf16  tile of A_norm (row tile i, contraction tile k)
        # e0_ref : (Np, Dp)     f32   layer-0 embeddings (resident, single-buffered)
        # out_ref: (Np, Dp)     f32   mean over [emb0, ..., embL] (resident)
        # emb_buf: (2, Np, Dp)  bf16  ping-pong layer embeddings (scratch)
        # sum_ref: (Np, Dp)     f32   running sum over layers (scratch)
        # acc_ref: (TM, Dp)     f32   per-row-tile contraction accumulator (scratch)
        layer = pl.program_id(0)
        i = pl.program_id(1)
        k = pl.program_id(2)
        n_layers = pl.num_programs(0)
        n_i = pl.num_programs(1)
        n_k = pl.num_programs(2)
        tm = acc_ref.shape[0]

        # One-time init: seed the ping-pong buffer and the layer sum with emb0.
        @pl.when((layer == 0) & (i == 0) & (k == 0))
        def _init():
            e0 = e0_ref[...]
            emb_buf[0] = e0.astype(emb_buf.dtype)
            sum_ref[...] = e0

        # New output-row tile: reset the contraction accumulator.
        @pl.when(k == 0)
        def _zero_acc():
            acc_ref[...] = jnp.zeros_like(acc_ref)

        # emb_l lives in slot layer % 2; emb_{l+1} is written into the other slot.
        read_slot = layer % 2
        k_start = pl.multiple_of(k * tk, tk)
        x = emb_buf[read_slot, pl.ds(k_start, tk), :]              # (TK, Dp) bf16
        acc_ref[...] += jnp.dot(a_ref[...], x,
                                preferred_element_type=jnp.float32)

        # Contraction for this (layer, row tile) is complete.
        @pl.when(k == n_k - 1)
        def _finish_row_tile():
            write_slot = 1 - read_slot
            i_start = pl.multiple_of(i * tm, tm)
            new_rows = acc_ref[...]                                # (TM, Dp) f32
            emb_buf[write_slot, pl.ds(i_start, tm), :] = new_rows.astype(
                emb_buf.dtype)
            sum_ref[pl.ds(i_start, tm), :] = (
                sum_ref[pl.ds(i_start, tm), :] + new_rows)

            # Last row tile of the last layer: sum_ref is complete -> write the
            # output as one lane-dense full-block store (single HBM writeback).
            @pl.when((layer == n_layers - 1) & (i == n_i - 1))
            def _write_out():
                out_ref[...] = (sum_ref[...] * inv_denom).astype(out_ref.dtype)

    return kernel


def lightgcn_forward(emb0, a_norm, num_layers):
    """Returns (emb0, mean-of-layer-embeddings), matching RecSysGNN.forward."""
    n, d = emb0.shape
    if num_layers == 0:
        return emb0, emb0

    n_pad = _round_up(n, 128)
    d_pad = _round_up(d, 128)

    # bf16 matmul operands (MXU native); accumulation stays f32 in the kernel.
    a_pad = jnp.zeros((n_pad, n_pad), jnp.bfloat16)
    a_pad = a_pad.at[:n, :n].set(a_norm.astype(jnp.bfloat16))
    e0_pad = jnp.zeros((n_pad, d_pad), jnp.float32)
    e0_pad = e0_pad.at[:n, :d].set(emb0.astype(jnp.float32))

    # MXU-shaped tiles: 256-wide M rows when possible, wider K tiles if they fit.
    tm = _pick_tile(n_pad, (256, 128))
    tk = _pick_tile(n_pad, (512, 256, 128))

    # Explicit VMEM budget (A tile double-buffered; emb0 single-buffered).
    vmem_bytes = (
        2 * tm * tk * 2          # A tile, bf16, double-buffered
        + n_pad * d_pad * 4      # emb0, f32, single-buffered
        + 2 * n_pad * d_pad * 4  # output block, f32
        + 2 * n_pad * d_pad * 2  # ping-pong layer embeddings, bf16
        + n_pad * d_pad * 4      # running layer sum, f32
        + tm * d_pad * 4         # row-tile contraction accumulator, f32
    )
    vmem_limit = int(min(max(2 * vmem_bytes, 16 * 1024 * 1024),
                         64 * 1024 * 1024))

    inv_denom = 1.0 / float(num_layers + 1)
    kernel = _make_lightgcn_kernel(inv_denom, tk)

    out_pad = pl.pallas_call(
        kernel,
        out_shape=jax.ShapeDtypeStruct((n_pad, d_pad), jnp.float32),
        grid_spec=pltpu.PrefetchScalarGridSpec(
            num_scalar_prefetch=0,
            grid=(num_layers, n_pad // tm, n_pad // tk),
            in_specs=[
                # A_norm tile: (row tile i, contraction tile k).
                pl.BlockSpec((tm, tk), lambda l, i, k: (i, k)),
                # emb0: whole array, constant index -> single-buffered.
                pl.BlockSpec((n_pad, d_pad), lambda l, i, k: (0, 0),
                             pipeline_mode=pl.Buffered(1)),
            ],
            out_specs=pl.BlockSpec((n_pad, d_pad), lambda l, i, k: (0, 0)),
            scratch_shapes=[
                pltpu.VMEM((2, n_pad, d_pad), jnp.bfloat16),  # ping-pong embs
                pltpu.VMEM((n_pad, d_pad), jnp.float32),      # running layer sum
                pltpu.VMEM((tm, d_pad), jnp.float32),         # row-tile acc
            ],
        ),
        # All axes sequential: layers feed each other and row/K tiles share the
        # ping-pong scratch, so no axis can be "parallel" inside this call.
        # TODO(synk): a per-layer pallas_call split (and a CSR/block-sparse A via
        # scalar prefetch) would allow a "parallel" row axis for v7x dual-TC and
        # scale past the dense O(N^2) adjacency.
        compiler_params=pltpu.CompilerParams(
            dimension_semantics=("arbitrary", "arbitrary", "arbitrary"),
            vmem_limit_bytes=vmem_limit,
        ),
    )(a_pad, e0_pad)

    return emb0, out_pad[:n, :d].astype(emb0.dtype)


def build_normalized_adjacency(edge_index, num_nodes):
    """Dense A_norm with A_norm[to, from] += deg^-1/2[from] * deg^-1/2[to].

    Mirrors LightGCNConv: degree computed over the destination (to_) row of
    edge_index, inf (deg == 0) mapped to 0.
    """
    from_, to_ = edge_index[0], edge_index[1]
    deg = jnp.zeros((num_nodes,), jnp.float32).at[to_].add(1.0)
    deg_inv_sqrt = jnp.where(deg > 0, jax.lax.rsqrt(jnp.maximum(deg, 1.0)), 0.0)
    norm = deg_inv_sqrt[from_] * deg_inv_sqrt[to_]
    a = jnp.zeros((num_nodes, num_nodes), jnp.float32).at[to_, from_].add(norm)
    return a


def reference_forward(emb0, a_norm, num_layers):
    """Pure-JAX (f32) reference of RecSysGNN.forward for correctness checking."""
    embs = [emb0]
    emb = emb0
    for _ in range(num_layers):
        emb = a_norm @ emb
        embs.append(emb)
    out = jnp.mean(jnp.stack(embs, axis=0), axis=0)
    return emb0, out


if __name__ == "__main__":
    # Small synthetic graph consistent with the module's constructor:
    #   RecSysGNN(latent_dim=64, num_layers=3, num_users=24, num_items=40)
    latent_dim = 64
    num_layers = 3
    num_users = 24
    num_items = 40
    num_nodes = num_users + num_items
    num_interactions = 200

    key = jax.random.PRNGKey(0)
    k_emb, k_u, k_i = jax.random.split(key, 3)

    # nn.init.normal_(embedding.weight, std=0.1)
    emb0 = 0.1 * jax.random.normal(k_emb, (num_nodes, latent_dim), jnp.float32)

    # Synthetic user-item interactions -> bidirectional edge_index, as in the
    # original script (items offset by n_users, edges stacked both ways).
    u_t = jax.random.randint(k_u, (num_interactions,), 0, num_users, jnp.int32)
    i_t = jax.random.randint(k_i, (num_interactions,), 0, num_items,
                             jnp.int32) + num_users
    edge_index = jnp.stack(
        [jnp.concatenate([u_t, i_t]), jnp.concatenate([i_t, u_t])], axis=0
    )

    a_norm = build_normalized_adjacency(edge_index, num_nodes)

    emb0_out, out = lightgcn_forward(emb0, a_norm, num_layers)
    jax.block_until_ready(out)

    # Verify against the pure-f32 JAX reference.  The kernel uses bf16 matmul
    # operands with f32 accumulation, so the tolerance is loosened accordingly.
    ref_emb0, ref_out = reference_forward(emb0, a_norm, num_layers)
    assert jnp.allclose(emb0_out, ref_emb0)
    assert jnp.allclose(out, ref_out, atol=2e-2, rtol=2e-2), (
        "max abs err = %e" % float(jnp.max(jnp.abs(out - ref_out))))

    print("KERNEL_OK")
</pallas_src>

<mosaic_0001>
module attributes {stable_mosaic.version = 11 : i64} {
  func.func @kernel(%arg0: i32, %arg1: i32, %arg2: i32, %arg3: memref<128x128xbf16, #tpu.memory_space<vmem>>, %arg4: memref<128x128xf32, #tpu.memory_space<vmem>>, %arg5: memref<128x128xf32, #tpu.memory_space<vmem>>, %arg6: memref<2x128x128xbf16, #tpu.memory_space<vmem>>, %arg7: memref<128x128xf32, #tpu.memory_space<vmem>>, %arg8: memref<128x128xf32, #tpu.memory_space<vmem>>) attributes {dimension_semantics = [#tpu.dimension_semantics<arbitrary>, #tpu.dimension_semantics<arbitrary>, #tpu.dimension_semantics<arbitrary>], iteration_bounds = array<i64: 3, 1, 1>, scalar_prefetch = 0 : i64, scratch_operands = 3 : i64, tpu.core_type = #tpu.core_type<tc>, window_params = [{transform_indices = @transform_0, window_bounds = array<i64: 128, 128>}, {pipeline_mode = #tpu.pipeline_mode<synchronous>, transform_indices = @transform_1, window_bounds = array<i64: 128, 128>}, {pipeline_mode = #tpu.pipeline_mode<synchronous>, transform_indices = @transform_2, window_bounds = array<i64: 128, 128>}]} {
    %c0_i32 = arith.constant 0 : i32
    %0 = arith.cmpi eq, %arg0, %c0_i32 : i32
    %c0_i32_0 = arith.constant 0 : i32
    %1 = arith.cmpi eq, %arg1, %c0_i32_0 : i32
    %2 = arith.andi %0, %1 : i1
    %c0_i32_1 = arith.constant 0 : i32
    %3 = arith.cmpi eq, %arg2, %c0_i32_1 : i32
    %4 = arith.andi %2, %3 : i1
    %5 = arith.extui %4 : i1 to i32
    %c0_i32_2 = arith.constant 0 : i32
    %6 = arith.cmpi ne, %5, %c0_i32_2 : i32
    scf.if %6 {
      %c0_17 = arith.constant 0 : index
      %c0_18 = arith.constant 0 : index
      %34 = vector.load %arg4[%c0_17, %c0_18] : memref<128x128xf32, #tpu.memory_space<vmem>>, vector<128x128xf32>
      %35 = arith.truncf %34 : vector<128x128xf32> to vector<128x128xbf16>
      %c0_19 = arith.constant 0 : index
      %c0_20 = arith.constant 0 : index
      %c0_21 = arith.constant 0 : index
      %36 = vector.load %arg6[%c0_19, %c0_20, %c0_21] : memref<2x128x128xbf16, #tpu.memory_space<vmem>>, vector<1x128x128xbf16>
      %37 = vector.shape_cast %36 : vector<1x128x128xbf16> to vector<128x128xbf16>
      %38 = vector.shape_cast %35 : vector<128x128xbf16> to vector<1x128x128xbf16>
      tpu.vector_store %arg6[%c0_19, %c0_20, %c0_21], %38 {strides = array<i32>} : memref<2x128x128xbf16, #tpu.memory_space<vmem>>, vector<1x128x128xbf16>,
      %c0_22 = arith.constant 0 : index
      %c0_23 = arith.constant 0 : index
      %39 = vector.load %arg7[%c0_22, %c0_23] : memref<128x128xf32, #tpu.memory_space<vmem>>, vector<128x128xf32>
      tpu.vector_store %arg7[%c0_22, %c0_23], %34 {strides = array<i32>} : memref<128x128xf32, #tpu.memory_space<vmem>>, vector<128x128xf32>,
    } else {
    }
    %c0_i32_3 = arith.constant 0 : i32
    %7 = arith.cmpi eq, %arg2, %c0_i32_3 : i32
    %8 = arith.extui %7 : i1 to i32
    %c0_i32_4 = arith.constant 0 : i32
    %9 = arith.cmpi ne, %8, %c0_i32_4 : i32
    scf.if %9 {
      %cst_17 = arith.constant 0.000000e+00 : f32
      %34 = vector.broadcast %cst_17 : f32 to vector<128x128xf32>
      %c0_18 = arith.constant 0 : index
      %c0_19 = arith.constant 0 : index
      %35 = vector.load %arg8[%c0_18, %c0_19] : memref<128x128xf32, #tpu.memory_space<vmem>>, vector<128x128xf32>
      tpu.vector_store %arg8[%c0_18, %c0_19], %34 {strides = array<i32>} : memref<128x128xf32, #tpu.memory_space<vmem>>, vector<128x128xf32>,
    } else {
    }
    %c2_i32 = arith.constant 2 : i32
    %c0_i32_5 = arith.constant 0 : i32
    %10 = arith.cmpi eq, %c2_i32, %c0_i32_5 : i32
    %c1_i32 = arith.constant 1 : i32
    %11 = arith.select %10, %c1_i32, %c2_i32 : i32
    %12 = arith.remsi %arg0, %11 : i32
    %c0_i32_6 = arith.constant 0 : i32
    %13 = arith.cmpi ne, %12, %c0_i32_6 : i32
    %c0_i32_7 = arith.constant 0 : i32
    %14 = arith.cmpi slt, %12, %c0_i32_7 : i32
    %c0_i32_8 = arith.constant 0 : i32
    %15 = arith.cmpi slt, %11, %c0_i32_8 : i32
    %16 = arith.xori %14, %15 : i1
    %17 = arith.andi %16, %13 : i1
    %18 = arith.addi %12, %11 : i32
    %19 = arith.select %17, %18, %12 : i32
    %c128_i32 = arith.constant 128 : i32
    %20 = arith.muli %arg2, %c128_i32 : i32
    %21 = tpu.assume_multiple %20, 128 : i32
    %22 = arith.index_cast %19 : i32 to index
    %23 = arith.index_cast %21 : i32 to index
    %c0 = arith.constant 0 : index
    %24 = vector.load %arg6[%22, %23, %c0] : memref<2x128x128xbf16, #tpu.memory_space<vmem>>, vector<1x128x128xbf16>
    %25 = vector.shape_cast %24 : vector<1x128x128xbf16> to vector<128x128xbf16>
    %c0_9 = arith.constant 0 : index
    %c0_10 = arith.constant 0 : index
    %26 = vector.load %arg8[%c0_9, %c0_10] : memref<128x128xf32, #tpu.memory_space<vmem>>, vector<128x128xf32>
    %c0_11 = arith.constant 0 : index
    %c0_12 = arith.constant 0 : index
    %27 = vector.load %arg3[%c0_11, %c0_12] : memref<128x128xbf16, #tpu.memory_space<vmem>>, vector<128x128xbf16>
    %cst = arith.constant dense<0.000000e+00> : vector<128x128xf32>
    %28 = tpu.matmul %27, %25, %cst {dimension_numbers = #tpu.dot_dimension_numbers<[1], [0], [0], [1], [0, 0, 1, 1], [], []>} : vector<128x128xbf16>, vector<128x128xbf16>, vector<128x128xf32> -> vector<128x128xf32>
    %29 = arith.addf %26, %28 : vector<128x128xf32>
    %c0_13 = arith.constant 0 : index
    %c0_14 = arith.constant 0 : index
    %30 = vector.load %arg8[%c0_13, %c0_14] : memref<128x128xf32, #tpu.memory_space<vmem>>, vector<128x128xf32>
    tpu.vector_store %arg8[%c0_13, %c0_14], %29 {strides = array<i32>} : memref<128x128xf32, #tpu.memory_space<vmem>>, vector<128x128xf32>,
    %c0_i32_15 = arith.constant 0 : i32
    %31 = arith.cmpi eq, %arg2, %c0_i32_15 : i32
    %32 = arith.extui %31 : i1 to i32
    %c0_i32_16 = arith.constant 0 : i32
    %33 = arith.cmpi ne, %32, %c0_i32_16 : i32
    scf.if %33 {
      %c1_i32_17 = arith.constant 1 : i32
      %34 = arith.subi %c1_i32_17, %19 : i32
      %c128_i32_18 = arith.constant 128 : i32
      %35 = arith.muli %arg1, %c128_i32_18 : i32
      %36 = tpu.assume_multiple %35, 128 : i32
      %c0_19 = arith.constant 0 : index
      %c0_20 = arith.constant 0 : index
      %37 = vector.load %arg8[%c0_19, %c0_20] : memref<128x128xf32, #tpu.memory_space<vmem>>, vector<128x128xf32>
      %38 = arith.truncf %37 : vector<128x128xf32> to vector<128x128xbf16>
      %39 = arith.index_cast %34 : i32 to index
      %40 = arith.index_cast %36 : i32 to index
      %c0_21 = arith.constant 0 : index
      %41 = vector.load %arg6[%39, %40, %c0_21] : memref<2x128x128xbf16, #tpu.memory_space<vmem>>, vector<1x128x128xbf16>
      %42 = vector.shape_cast %41 : vector<1x128x128xbf16> to vector<128x128xbf16>
      %43 = vector.shape_cast %38 : vector<128x128xbf16> to vector<1x128x128xbf16>
      tpu.vector_store %arg6[%39, %40, %c0_21], %43 {strides = array<i32>} : memref<2x128x128xbf16, #tpu.memory_space<vmem>>, vector<1x128x128xbf16>,
      %44 = arith.index_cast %36 : i32 to index
      %c0_22 = arith.constant 0 : index
      %45 = vector.load %arg7[%44, %c0_22] : memref<128x128xf32, #tpu.memory_space<vmem>>, vector<128x128xf32>
      %46 = arith.addf %45, %37 : vector<128x128xf32>
      %47 = arith.index_cast %36 : i32 to index
      %c0_23 = arith.constant 0 : index
      %48 = vector.load %arg7[%47, %c0_23] : memref<128x128xf32, #tpu.memory_space<vmem>>, vector<128x128xf32>
      tpu.vector_store %arg7[%47, %c0_23], %46 {strides = array<i32>} : memref<128x128xf32, #tpu.memory_space<vmem>>, vector<128x128xf32>,
      %c2_i32_24 = arith.constant 2 : i32
      %49 = arith.cmpi eq, %arg0, %c2_i32_24 : i32
      %c0_i32_25 = arith.constant 0 : i32
      %50 = arith.cmpi eq, %arg1, %c0_i32_25 : i32
      %51 = arith.andi %49, %50 : i1
      %52 = arith.extui %51 : i1 to i32
      %c0_i32_26 = arith.constant 0 : i32
      %53 = arith.cmpi ne, %52, %c0_i32_26 : i32
      scf.if %53 {
        %c0_27 = arith.constant 0 : index
        %c0_28 = arith.constant 0 : index
        %54 = vector.load %arg7[%c0_27, %c0_28] : memref<128x128xf32, #tpu.memory_space<vmem>>, vector<128x128xf32>
        %cst_29 = arith.constant 2.500000e-01 : f32
        %55 = vector.broadcast %cst_29 : f32 to vector<128x128xf32>
        %56 = arith.mulf %54, %55 : vector<128x128xf32>
        %c0_30 = arith.constant 0 : index
        %c0_31 = arith.constant 0 : index
        %57 = vector.load %arg5[%c0_30, %c0_31] : memref<128x128xf32, #tpu.memory_space<vmem>>, vector<128x128xf32>
        tpu.vector_store %arg5[%c0_30, %c0_31], %56 {strides = array<i32>} : memref<128x128xf32, #tpu.memory_space<vmem>>, vector<128x128xf32>,
      } else {
      }
    } else {
    }
    return
  }
  func.func @transform_0(%arg0: i32, %arg1: i32, %arg2: i32) -> (i32, i32) {
    %c0_i32 = arith.constant 0 : i32
    return %arg1, %arg2 : i32, i32
  }
  func.func @transform_1(%arg0: i32, %arg1: i32, %arg2: i32) -> (i32, i32) {
    %c0_i32 = arith.constant 0 : i32
    %c0_i32_0 = arith.constant 0 : i32
    %c0_i32_1 = arith.constant 0 : i32
    return %c0_i32, %c0_i32_0 : i32, i32
  }
  func.func @transform_2(%arg0: i32, %arg1: i32, %arg2: i32) -> (i32, i32) {
    %c0_i32 = arith.constant 0 : i32
    %c0_i32_0 = arith.constant 0 : i32
    %c0_i32_1 = arith.constant 0 : i32
    return %c0_i32, %c0_i32_0 : i32, i32
  }
}

</mosaic_0001>

<bundles_post_ra>
// kernel: tpu_custom_call.1
= control target key start
LH: loop header
LB: loop body
LE: loop exit
PB: predicated region body
PF: predicated region fallthrough
CT: control target
= control target key end

     0   :  { %7 = vsyncpa [#allocation6], 0  ;;  %s1185_s0 = inlined_call_operand.hbm [shape: bf16[128,128], index: 0, kind: input, shape index: {}]   ;;  %s1186_s1 = inlined_call_operand.hbm [shape: f32[128,128], index: 1, kind: input, shape index: {}]   ;;  %s1187_s2 = inlined_call_operand.hbm [shape: f32[128,128], index: 2, kind: output, shape index: {}]  }
   0x1   :  { %8 = vsyncpa [#allocation9], 0 }
   0x2   :  { %9 = vsyncpa [#allocation7], 0  ;;  %s1019_s9 = smov 0   ;;  %s1021_s10 = smov 0  }
   0x3   :  { %s1023_s11 = smov 0  }
   0x4 LB: > { %s713_s12 = sadd.s32 4294967295, %s993_s11   ;;  %s34_s13 = sadd.s32 1, %s989_s10  ;;  %s993_s11 = sphi %s1023_s11, %s15_s11   ;;  %s989_s10 = sphi %s1021_s10, %s1198_s10   ;;  %s985_s9 = sphi %s1019_s9, %s1197_s9  }
   0x5   : > { %p36_p0 = scmp.ge.s32.totalorder %s34_s13, 3  ;;  %p714_p1 = scmp.ge.s32.totalorder %s993_s11, 1 }
   0x6   : > { %p109_p2 = scmp.lt.s32.totalorder %s993_s11, 4  ;;  %p1046_p4 = scmp.eq.s32.totalorder %s713_s12, 0 }
   0x7   : > { %s1200_s13 = smov (%p36_p0, %s34_s13), 0  ;;  %s995_s16 = smov [#allocation5]  }
   0x8   : > { %p1040_p3 = pnand %p714_p1, %p109_p2  ;;  %s125_s17 = sshll.u32 %s995_s16, 4  ;;  %s126_s17 = int_to_ptr.vmem [resolvable:$true] %s125_s17 }
   0x9   : > { %s1192_s15 = scalar_select %p1046_p4, 1, 0 }
   0xa   : > { %s1191_s14 = scalar_select %p1040_p3, 1, 0 }
   0xb   : > { %p823_p5 = pneg %p1040_p3  ;;  %s996_s19 = smov [#allocation8]  }
   0xc   : > { %s138_s20 = sshll.u32 %s996_s19, 4  ;;  %s877_s23 = scalar_lea.hbm %s1185_s0, 1024  ;;  %s1058_s20 = int_to_ptr.vmem [resolvable:$true] %s138_s20 }
   0xd   : > { %p1054_p6 = pnand %p1046_p4, %p823_p5  ;;  %p878_p7 = scmp.ne.s32.totalorder %s1185_s0, %s877_s23 }
   0xe   : > { %p884_p11 = scmp.lt.u32.totalorder %s877_s23, %s1185_s0 }
   0xf   : > { %p879_p8 = pneg %p1054_p6 }
  0x11   : > { %p880_p9 = pnand %p879_p8, %p878_p7 }
  0x13   : > { %p881_p10 = pneg %p880_p9 }
  0x15   : > { %p886_p12 = pnand %p884_p11, %p881_p10 }
  0x17   : > { %889 = shalt.err (!%p886_p12)
}
  0x18   : > { %s890_s28 = scalar_lea.vmem %s126_s17, 1024  ;;  %p898_p2 = scmp.lt.s32.totalorder %s126_s17, %s126_s17 }
  0x19   : > { %p891_p13 = scmp.ne.s32.totalorder %s126_s17, %s890_s28  ;;  %p899_p5 = scmp.lt.s32.totalorder %s890_s28, %s890_s28 }
  0x1b   : > { %p893_p0 = pnand %p891_p13, %p879_p8  ;;  %p900_p4 = por %p899_p5, %p898_p2 }
  0x1d   : > { %p894_p1 = pneg %p893_p0 }
  0x1f   : > { %p901_p3 = pnand %p900_p4, %p894_p1 }
  0x21   : > { %904 = shalt.err (!%p901_p3)
}
  0x22   : > { %s997_s29 = smov 64   ;;  %s998_s30 = smov 4  }
  0x23   : > { %826 = dma.hbm_to_vmem [thread:$0]  (!%p1054_p6), %s1185_s0, 1024, %s126_s17, [#allocation6], %s997_s29, %s997_s29, %s998_s30  }
  0x24   : > { %s905_s7 = scalar_lea.hbm %s1186_s1, 2048 }
  0x25   : > { %p906_p7 = scmp.ne.s32.totalorder %s1186_s1, %s905_s7  ;;  %p912_p9 = scmp.lt.u32.totalorder %s905_s7, %s1186_s1 }
  0x27   : > { %p908_p3 = pnand %p906_p7, %p879_p8 }
  0x29   : > { %p909_p4 = pneg %p908_p3 }
  0x2b   : > { %p914_p10 = pnand %p912_p9, %p909_p4 }
  0x2d   : > { %917 = shalt.err (!%p914_p10)
}
  0x2e   : > { %s918_s17 = scalar_lea.vmem %s1058_s20, 2048  ;;  %p926_p0 = scmp.lt.s32.totalorder %s1058_s20, %s1058_s20 }
  0x2f   : > { %p919_p11 = scmp.ne.s32.totalorder %s1058_s20, %s918_s17  ;;  %p927_p1 = scmp.lt.s32.totalorder %s918_s17, %s918_s17 }
  0x31   : > { %p921_p12 = pnand %p919_p11, %p879_p8  ;;  %p928_p2 = por %p927_p1, %p926_p0 }
  0x33   : > { %p922_p13 = pneg %p921_p12 }
  0x35   : > { %p929_p5 = pnand %p928_p2, %p922_p13 }
  0x37   : > { %932 = shalt.err (!%p929_p5)
}
  0x38   : > { %s999_s22 = smov 128   ;;  %s1000_s23 = smov 8  }
  0x39   : > { %829 = dma.hbm_to_vmem [thread:$0]  (!%p1054_p6), %s1186_s1, 2048, %s1058_s20, [#allocation9], %s999_s22, %s999_s22, %s1000_s23  }
  0x3a   : > { %p1194_p7 = scmp.ne.s32.totalorder %s1191_s14, 0 }
  0x3b   : > { %p1195_p8 = scmp.ne.s32.totalorder (!%p1194_p7), %s1192_s15, 0 }
  0x3c   : > { %154 = sbr.rel (%p1194_p7) target bundleno = 391 (0x187), region = 28 }
  0x43   : > { %972 = dma.done.wait (%p1195_p8), [#allocation6], 1024  }
  0x44   : > { %974 = vsyncadd (%p1195_p8), [#allocation6], 4294966272 }
  0x45   : > { %976 = dma.done.wait (%p1195_p8), [#allocation9], 2048  }
  0x46   : > { %978 = vsyncadd (%p1195_p8), [#allocation9], 4294965248  ;;  %p172_p3 = scmp.eq.s32.totalorder %s985_s9, 0 }
  0x47   : > { %v181_v0 = vld [vmem:[#allocation8] sm:$0xff] (%p172_p3)  ;;  %v182_v1 = vld [vmem:[#allocation8 + $0x8] sm:$0xff] (%p172_p3)  ;;  %v183_v2 = vld [vmem:[#allocation8 + $0x10] sm:$0xff] (%p172_p3) }
  0x48   : > { %180 = sbr.rel (!%p172_p3) target bundleno = 84 (0x54), region = 40  ;;  %v197_v3 = vpack.c.bf16 (%p172_p3), %v182_v1, %v181_v0  ;;  %213 = vst [vmem:[#allocation3] sm:$0xff] (%p172_p3), %v181_v0  ;;  %214 = vst [vmem:[#allocation3 + $0x8] sm:$0xff] (%p172_p3), %v182_v1  ;;  %v184_v4 = vld [vmem:[#allocation8 + $0x18] sm:$0xff] (%p172_p3)  ;;  %v185_v5 = vld [vmem:[#allocation8 + $0x20] sm:$0xff] (%p172_p3) }
  0x49   : > { %215 = vst [vmem:[#allocation3 + $0x10] sm:$0xff] (%p172_p3), %v183_v2  ;;  %v186_v6 = vld [vmem:[#allocation8 + $0x28] sm:$0xff] (%p172_p3)  ;;  %v198_v7 = vpack.c.bf16 (%p172_p3), %v184_v4, %v183_v2  ;;  %216 = vst [vmem:[#allocation3 + $0x18] sm:$0xff] (%p172_p3), %v184_v4  ;;  %v187_v9 = vld [vmem:[#allocation8 + $0x30] sm:$0xff] (%p172_p3) }
  0x4a   : > { %v199_v8 = vpack.c.bf16 (%p172_p3), %v186_v6, %v185_v5  ;;  %217 = vst [vmem:[#allocation3 + $0x20] sm:$0xff] (%p172_p3), %v185_v5  ;;  %218 = vst [vmem:[#allocation3 + $0x28] sm:$0xff] (%p172_p3), %v186_v6  ;;  %v188_v10 = vld [vmem:[#allocation8 + $0x38] sm:$0xff] (%p172_p3)  ;;  %v189_v11 = vld [vmem:[#allocation8 + $0x40] sm:$0xff] (%p172_p3) }
  0x4b   : > { %205 = vst [vmem:[#allocation2] sm:$0xff] (%p172_p3), %v197_v3  ;;  %v200_v12 = vpack.c.bf16 (%p172_p3), %v188_v10, %v187_v9  ;;  %219 = vst [vmem:[#allocation3 + $0x30] sm:$0xff] (%p172_p3), %v187_v9  ;;  %v190_v13 = vld [vmem:[#allocation8 + $0x48] sm:$0xff] (%p172_p3)  ;;  %v191_v14 = vld [vmem:[#allocation8 + $0x50] sm:$0xff] (%p172_p3) }
  0x4c   : > { %220 = vst [vmem:[#allocation3 + $0x38] sm:$0xff] (%p172_p3), %v188_v10  ;;  %221 = vst [vmem:[#allocation3 + $0x40] sm:$0xff] (%p172_p3), %v189_v11  ;;  %v192_v15 = vld [vmem:[#allocation8 + $0x58] sm:$0xff] (%p172_p3)  ;;  %v201_v16 = vpack.c.bf16 (%p172_p3), %v190_v13, %v189_v11  ;;  %v193_v18 = vld [vmem:[#allocation8 + $0x60] sm:$0xff] (%p172_p3) }
  0x4d   : > { %206 = vst [vmem:[#allocation2 + $0x8] sm:$0xff] (%p172_p3), %v198_v7  ;;  %207 = vst [vmem:[#allocation2 + $0x10] sm:$0xff] (%p172_p3), %v199_v8  ;;  %v202_v17 = vpack.c.bf16 (%p172_p3), %v192_v15, %v191_v14  ;;  %v194_v19 = vld [vmem:[#allocation8 + $0x68] sm:$0xff] (%p172_p3)  ;;  %v195_v20 = vld [vmem:[#allocation8 + $0x70] sm:$0xff] (%p172_p3) }
  0x4e   : > { %222 = vst [vmem:[#allocation3 + $0x48] sm:$0xff] (%p172_p3), %v190_v13  ;;  %223 = vst [vmem:[#allocation3 + $0x50] sm:$0xff] (%p172_p3), %v191_v14  ;;  %v203_v21 = vpack.c.bf16 (%p172_p3), %v194_v19, %v193_v18  ;;  %v196_v22 = vld [vmem:[#allocation8 + $0x78] sm:$0xff] (%p172_p3) }
  0x4f   : > { %224 = vst [vmem:[#allocation3 + $0x58] sm:$0xff] %v192_v15  ;;  %208 = vst [vmem:[#allocation2 + $0x18] sm:$0xff] %v200_v12  ;;  %v204_v23 = vpack.c.bf16 %v196_v22, %v195_v20 }
  0x50   : > { %225 = vst [vmem:[#allocation3 + $0x60] sm:$0xff] %v193_v18  ;;  %226 = vst [vmem:[#allocation3 + $0x68] sm:$0xff] %v194_v19 }
  0x51   : > { %227 = vst [vmem:[#allocation3 + $0x70] sm:$0xff] %v195_v20  ;;  %209 = vst [vmem:[#allocation2 + $0x20] sm:$0xff] %v201_v16 }
  0x52   : > { %210 = vst [vmem:[#allocation2 + $0x28] sm:$0xff] %v202_v17  ;;  %228 = vst [vmem:[#allocation3 + $0x78] sm:$0xff] %v196_v22 }
  0x53   : > { %211 = vst [vmem:[#allocation2 + $0x30] sm:$0xff] %v203_v21  ;;  %212 = vst [vmem:[#allocation2 + $0x38] sm:$0xff] %v204_v23 }
  0x54 PF: > { %p248_p6 = scmp.lt.s32.totalorder %s985_s9, 0  ;;  %s249_s14 = ssub.s32 0, %s985_s9  ;;  %v869_v24 = vld [vmem:[#allocation5] sm:$0xff]   ;;  %v871_v34 = vld [vmem:[#allocation5 + $0x8] sm:$0xff]   ;;  %v873_v36 = vld [vmem:[#allocation5 + $0x10] sm:$0xff]  }
  0x55   : > { %s722_s15 = smin.u32 %s985_s9, %s249_s14  ;;  %v870_v25 = vld [vmem:[#allocation5 + $0x20] sm:$0xff]   ;;  %779 = vmatprep.mubr.bf16.mxu0 %v869_v24  ;;  %v872_v35 = vld [vmem:[#allocation5 + $0x28] sm:$0xff]   ;;  %v874_v37 = vld [vmem:[#allocation5 + $0x30] sm:$0xff]   ;;  %p576_p9 = scmp.eq.s32.totalorder %s985_s9, 2 }
  0x56   : > { %s251_s18 = sand.u32 1, %s722_s15   ;;  %787 = vmatprep.mubr.bf16.mxu1 %v870_v25  ;;  %v875_v38 = vld [vmem:[#allocation5 + $0x18] sm:$0xff]   ;;  %v530_v40 = vld [vmem:[#allocation3 + $0x10] sm:$0xff]  ;;  %v528_v42 = vld [vmem:[#allocation3] sm:$0xff] }
  0x57   : > { %s252_s20 = ssub.s32 0, %s251_s18  ;;  %v876_v39 = vld [vmem:[#allocation5 + $0x38] sm:$0xff]   ;;  %v529_v52 = vld [vmem:[#allocation3 + $0x8] sm:$0xff]  ;;  %v534_v4 = vld [vmem:[#allocation3 + $0x30] sm:$0xff] }
  0x58   : > { %s1202_s20 = smov (!%p248_p6, %s252_s20), %s251_s18  ;;  %v536_v43 = vld [vmem:[#allocation3 + $0x40] sm:$0xff]  ;;  %v531_v46 = vld [vmem:[#allocation3 + $0x18] sm:$0xff]  ;;  %v542_v5 = vld [vmem:[#allocation3 + $0x70] sm:$0xff] }
  0x59   : > { %p724_p4 = scmp.lt.s32.totalorder %s1202_s20, 0  ;;  %s258_s26 = sadd.s32 2, %s1202_s20  ;;  %v532_v6 = vld [vmem:[#allocation3 + $0x20] sm:$0xff]  ;;  %v535_v10 = vld [vmem:[#allocation3 + $0x38] sm:$0xff]  ;;  %v533_v16 = vld [vmem:[#allocation3 + $0x28] sm:$0xff] }
  0x5a   : > { %v538_v41 = vld [vmem:[#allocation3 + $0x50] sm:$0xff]  ;;  %v537_v53 = vld [vmem:[#allocation3 + $0x48] sm:$0xff]  ;;  %v540_v7 = vld [vmem:[#allocation3 + $0x60] sm:$0xff] }
  0x5b   : > { %s1204_s26 = smov (!%p724_p4, %s258_s26), %s1202_s20  ;;  %v539_v47 = vld [vmem:[#allocation3 + $0x58] sm:$0xff]  ;;  %v541_v17 = vld [vmem:[#allocation3 + $0x68] sm:$0xff] }
  0x5c   : > { %s744_s27 = sshll.u32 %s1204_s26, 6  ;;  %s487_s29 = ssub.s32 1, %s1204_s26  ;;  %v543_v11 = vld [vmem:[#allocation3 + $0x78] sm:$0xff] }
  0x5d   : > { %s1124_s28 = scalar_lea.vmem [#allocation2], %s744_s27  ;;  %s745_s30 = sshll.u32 %s487_s29, 6 }
  0x5e   : > { %v267_v26 = vld [vmem:[%s1124_s28] sm:$0xff]  ;;  %v268_v27 = vld [vmem:[%s1124_s28 + $0x8] sm:$0xff]  ;;  %v269_v28 = vld [vmem:[%s1124_s28 + $0x10] sm:$0xff]  ;;  %s1136_s3 = scalar_lea.vmem [#allocation2], %s745_s30 }
  0x5f   : > { %763 = vmatprep.subr.bf16.mxu0 %v267_v26  ;;  %795 = vmatprep.subr.bf16.mxu1 %v267_v26  ;;  %v270_v29 = vld [vmem:[%s1124_s28 + $0x18] sm:$0xff]  ;;  %v271_v30 = vld [vmem:[%s1124_s28 + $0x20] sm:$0xff]  ;;  %v272_v31 = vld [vmem:[%s1124_s28 + $0x28] sm:$0xff] }
  0x60   : > { %764 = vmatpush3.bf16.msra.mxu0 %v267_v26  ;;  %803 = vmatpush3.bf16.msra.mxu1 %v267_v26  ;;  %v273_v32 = vld [vmem:[%s1124_s28 + $0x30] sm:$0xff]  ;;  %v274_v33 = vld [vmem:[%s1124_s28 + $0x38] sm:$0xff] }
  0x61   : > { %765 = vmatprep.subr.bf16.mxu0 %v268_v27  ;;  %796 = vmatprep.subr.bf16.mxu1 %v268_v27 }
  0x64   : > { %766 = vmatpush3.bf16.msra.mxu0 %v268_v27  ;;  %804 = vmatpush3.bf16.msra.mxu1 %v268_v27 }
  0x65   : > { %767 = vmatprep.subr.bf16.mxu0 %v269_v28  ;;  %797 = vmatprep.subr.bf16.mxu1 %v269_v28 }
  0x68   : > { %768 = vmatpush3.bf16.msra.mxu0 %v269_v28  ;;  %805 = vmatpush3.bf16.msra.mxu1 %v269_v28 }
  0x69   : > { %769 = vmatprep.subr.bf16.mxu0 %v270_v29  ;;  %798 = vmatprep.subr.bf16.mxu1 %v270_v29 }
  0x6c   : > { %770 = vmatpush3.bf16.msra.mxu0 %v270_v29  ;;  %806 = vmatpush3.bf16.msra.mxu1 %v270_v29 }
  0x6d   : > { %771 = vmatprep.subr.bf16.mxu0 %v271_v30  ;;  %799 = vmatprep.subr.bf16.mxu1 %v271_v30 }
  0x70   : > { %772 = vmatpush3.bf16.msra.mxu0 %v271_v30  ;;  %807 = vmatpush3.bf16.msra.mxu1 %v271_v30 }
  0x71   : > { %773 = vmatprep.subr.bf16.mxu0 %v272_v31  ;;  %800 = vmatprep.subr.bf16.mxu1 %v272_v31 }
  0x74   : > { %774 = vmatpush3.bf16.msra.mxu0 %v272_v31  ;;  %808 = vmatpush3.bf16.msra.mxu1 %v272_v31 }
  0x75   : > { %775 = vmatprep.subr.bf16.mxu0 %v273_v32  ;;  %801 = vmatprep.subr.bf16.mxu1 %v273_v32 }
  0x78   : > { %776 = vmatpush3.bf16.msra.mxu0 %v273_v32  ;;  %809 = vmatpush3.bf16.msra.mxu1 %v273_v32 }
  0x79   : > { %777 = vmatprep.subr.bf16.mxu0 %v274_v33  ;;  %802 = vmatprep.subr.bf16.mxu1 %v274_v33 }
  0x7c   : > { %778 = vmatpush3.bf16.msra.mxu0 %v274_v33  ;;  %810 = vmatpush3.bf16.msra.mxu1 %v274_v33 }
  0x7f   : > { %780 = vmatmul.mubr.bf16.vlgmr.msra.gmra.mrb[0].mxu0 %v871_v34  ;;  %788 = vmatmul.mubr.bf16.vlgmr.msra.gmra.mrb[0].mxu1 %v872_v35 }
  0x80   : > { %783 = vmatprep.mubr.bf16.mxu0 %v873_v36  ;;  %791 = vmatprep.mubr.bf16.mxu1 %v874_v37 }
  0x87   : > { %784 = vmatmul.mubr.bf16.gmra.mrb[4].mxu0 %v875_v38  ;;  %792 = vmatmul.mubr.bf16.gmra.mrb[4].mxu1 %v876_v39 }
 0x152   : > { %v781_v44 = vpop.f32.mrb[0].mxu0  ;;  %v789_v45 = vpop.f32.mrb[0].mxu1 }
 0x153   : > { %v546_v48 = vadd.f32 %v781_v44, %v530_v40  ;;  %v554_v49 = vadd.f32 %v789_v45, %v538_v41  ;;  %v389_v50 = vpop.f32.mrb[1].mxu0  ;;  %v421_v51 = vpop.f32.mrb[1].mxu1 }
 0x154   : > { %v544_v54 = vadd.f32 %v528_v42, %v389_v50  ;;  %v552_v55 = vadd.f32 %v536_v43, %v421_v51  ;;  %v782_v56 = vpop.f32.mrb[2].mxu0  ;;  %v790_v57 = vpop.f32.mrb[2].mxu1 }
 0x155   : > { %562 = vst [vmem:[#allocation3 + $0x10] sm:$0xff] %v546_v48  ;;  %570 = vst [vmem:[#allocation3 + $0x50] sm:$0xff] %v554_v49  ;;  %v506_v58 = vpack.c.bf16 %v782_v56, %v781_v44  ;;  %v547_v59 = vadd.f32 %v782_v56, %v531_v46  ;;  %v510_v60 = vpack.c.bf16 %v790_v57, %v789_v45  ;;  %v392_v62 = vpop.f32.mrb[3].mxu0  ;;  %v424_v63 = vpop.f32.mrb[3].mxu1 }
 0x156   : > { %v555_v61 = vadd.f32 %v790_v57, %v539_v47  ;;  %560 = vst [vmem:[#allocation3] sm:$0xff] %v544_v54  ;;  %568 = vst [vmem:[#allocation3 + $0x40] sm:$0xff] %v552_v55  ;;  %v505_v0 = vpack.c.bf16 %v392_v62, %v389_v50  ;;  %v545_v1 = vadd.f32 %v529_v52, %v392_v62 }
 0x157   : > { %v509_v2 = vpack.c.bf16 %v424_v63, %v421_v51  ;;  %v553_v3 = vadd.f32 %v537_v53, %v424_v63  ;;  %520 = vst [vmem:[%s1136_s3 + $0x8] sm:$0xff] %v506_v58  ;;  %563 = vst [vmem:[#allocation3 + $0x18] sm:$0xff] %v547_v59 }
 0x158   : > { %524 = vst [vmem:[%s1136_s3 + $0x28] sm:$0xff] %v510_v60  ;;  %571 = vst [vmem:[#allocation3 + $0x58] sm:$0xff] %v555_v61 }
 0x159   : > { %519 = vst [vmem:[%s1136_s3] sm:$0xff] %v505_v0  ;;  %561 = vst [vmem:[#allocation3 + $0x8] sm:$0xff] %v545_v1 }
 0x15a   : > { %523 = vst [vmem:[%s1136_s3 + $0x20] sm:$0xff] %v509_v2  ;;  %569 = vst [vmem:[#allocation3 + $0x48] sm:$0xff] %v553_v3  ;;  %v785_v8 = vpop.f32.mrb[4].mxu0  ;;  %v793_v9 = vpop.f32.mrb[4].mxu1 }
 0x15b   : > { %v550_v12 = vadd.f32 %v785_v8, %v534_v4  ;;  %v558_v13 = vadd.f32 %v793_v9, %v542_v5  ;;  %v405_v14 = vpop.f32.mrb[5].mxu0  ;;  %v437_v15 = vpop.f32.mrb[5].mxu1 }
 0x15c   : > { %v548_v18 = vadd.f32 %v532_v6, %v405_v14  ;;  %v556_v19 = vadd.f32 %v540_v7, %v437_v15  ;;  %v786_v20 = vpop.f32.mrb[6].mxu0  ;;  %v794_v21 = vpop.f32.mrb[6].mxu1  ;;  %580 = sbr.rel (!%p576_p9) target bundleno = 365 (0x16d), region = 52  ;;  %v583_v34 = vld [vmem:[#allocation3 + $0x10] sm:$0xff] (%p576_p9) }
 0x15d   : > { %566 = vst [vmem:[#allocation3 + $0x30] sm:$0xff] %v550_v12  ;;  %574 = vst [vmem:[#allocation3 + $0x70] sm:$0xff] %v558_v13  ;;  %v508_v22 = vpack.c.bf16 %v786_v20, %v785_v8  ;;  %v551_v23 = vadd.f32 %v786_v20, %v535_v10  ;;  %v512_v24 = vpack.c.bf16 %v794_v21, %v793_v9  ;;  %v408_v26 = vpop.f32.mrb[7].mxu0  ;;  %v440_v27 = vpop.f32.mrb[7].mxu1  ;;  %v581_v32 = vld [vmem:[#allocation3] sm:$0xff] (%p576_p9)  ;;  %v599_v37 = vmul.f32 (%p576_p9), 0.25, %v583_v34 }
 0x15e   : > { %v559_v25 = vadd.f32 %v794_v21, %v543_v11  ;;  %564 = vst [vmem:[#allocation3 + $0x20] sm:$0xff] %v548_v18  ;;  %572 = vst [vmem:[#allocation3 + $0x60] sm:$0xff] %v556_v19  ;;  %v507_v28 = vpack.c.bf16 %v408_v26, %v405_v14  ;;  %v549_v29 = vadd.f32 %v533_v16, %v408_v26  ;;  %v597_v35 = vmul.f32 (%p576_p9), 0.25, %v581_v32  ;;  %v584_v38 = vld [vmem:[#allocation3 + $0x18] sm:$0xff] (%p576_p9)  ;;  %v589_v46 = vld [vmem:[#allocation3 + $0x40] sm:$0xff] (%p576_p9) }
 0x15f   : > { %v511_v30 = vpack.c.bf16 %v440_v27, %v437_v15  ;;  %v557_v31 = vadd.f32 %v541_v17, %v440_v27  ;;  %522 = vst [vmem:[%s1136_s3 + $0x18] sm:$0xff] %v508_v22  ;;  %567 = vst [vmem:[#allocation3 + $0x38] sm:$0xff] %v551_v23  ;;  %v600_v41 = vmul.f32 (%p576_p9), 0.25, %v584_v38  ;;  %v605_v49 = vmul.f32 (%p576_p9), 0.25, %v589_v46  ;;  %v591_v51 = vld [vmem:[#allocation3 + $0x50] sm:$0xff] (%p576_p9)  ;;  %v592_v52 = vld [vmem:[#allocation3 + $0x58] sm:$0xff] (%p576_p9) }
 0x160   : > { %526 = vst [vmem:[%s1136_s3 + $0x38] sm:$0xff] %v512_v24  ;;  %575 = vst [vmem:[#allocation3 + $0x78] sm:$0xff] %v559_v25  ;;  %v582_v33 = vld [vmem:[#allocation3 + $0x8] sm:$0xff] (%p576_p9)  ;;  %v607_v54 = vmul.f32 (%p576_p9), 0.25, %v591_v51  ;;  %v608_v55 = vmul.f32 (%p576_p9), 0.25, %v592_v52 }
 0x161   : > { %521 = vst [vmem:[%s1136_s3 + $0x10] sm:$0xff] %v507_v28  ;;  %565 = vst [vmem:[#allocation3 + $0x28] sm:$0xff] %v549_v29  ;;  %v598_v36 = vmul.f32 (%p576_p9), 0.25, %v582_v33  ;;  %v590_v50 = vld [vmem:[#allocation3 + $0x48] sm:$0xff] (%p576_p9) }
 0x162   : > { %525 = vst [vmem:[%s1136_s3 + $0x30] sm:$0xff] %v511_v30  ;;  %573 = vst [vmem:[#allocation3 + $0x68] sm:$0xff] %v557_v31  ;;  %v606_v53 = vmul.f32 (%p576_p9), 0.25, %v590_v50 }
 0x163   : > { %613 = vst [vmem:[#allocation10] sm:$0xff] %v597_v35  ;;  %614 = vst [vmem:[#allocation10 + $0x8] sm:$0xff] %v598_v36 }
 0x164   : > { %v587_v44 = vld [vmem:[#allocation3 + $0x30] sm:$0xff]  ;;  %615 = vst [vmem:[#allocation10 + $0x10] sm:$0xff] %v599_v37  ;;  %616 = vst [vmem:[#allocation10 + $0x18] sm:$0xff] %v600_v41 }
 0x165   : > { %v585_v39 = vld [vmem:[#allocation3 + $0x20] sm:$0xff]  ;;  %v603_v47 = vmul.f32 0.25, %v587_v44  ;;  %v595_v58 = vld [vmem:[#allocation3 + $0x70] sm:$0xff]  ;;  %621 = vst [vmem:[#allocation10 + $0x40] sm:$0xff] %v605_v49  ;;  %622 = vst [vmem:[#allocation10 + $0x48] sm:$0xff] %v606_v53 }
 0x166   : > { %v601_v42 = vmul.f32 0.25, %v585_v39  ;;  %v588_v45 = vld [vmem:[#allocation3 + $0x38] sm:$0xff]  ;;  %v593_v56 = vld [vmem:[#allocation3 + $0x60] sm:$0xff]  ;;  %v611_v61 = vmul.f32 0.25, %v595_v58  ;;  %623 = vst [vmem:[#allocation10 + $0x50] sm:$0xff] %v607_v54  ;;  %624 = vst [vmem:[#allocation10 + $0x58] sm:$0xff] %v608_v55 }
 0x167   : > { %v604_v48 = vmul.f32 0.25, %v588_v45  ;;  %619 = vst [vmem:[#allocation10 + $0x30] sm:$0xff] %v603_v47  ;;  %v609_v59 = vmul.f32 0.25, %v593_v56  ;;  %v596_v62 = vld [vmem:[#allocation3 + $0x78] sm:$0xff] }
 0x168   : > { %v586_v40 = vld [vmem:[#allocation3 + $0x28] sm:$0xff]  ;;  %617 = vst [vmem:[#allocation10 + $0x20] sm:$0xff] %v601_v42  ;;  %v612_v63 = vmul.f32 0.25, %v596_v62  ;;  %627 = vst [vmem:[#allocation10 + $0x70] sm:$0xff] %v611_v61 }
 0x169   : > { %v602_v43 = vmul.f32 0.25, %v586_v40  ;;  %v594_v57 = vld [vmem:[#allocation3 + $0x68] sm:$0xff]  ;;  %620 = vst [vmem:[#allocation10 + $0x38] sm:$0xff] %v604_v48  ;;  %625 = vst [vmem:[#allocation10 + $0x60] sm:$0xff] %v609_v59 }
 0x16a   : > { %v610_v60 = vmul.f32 0.25, %v594_v57  ;;  %628 = vst [vmem:[#allocation10 + $0x78] sm:$0xff] %v612_v63 }
 0x16b   : > { %618 = vst [vmem:[#allocation10 + $0x28] sm:$0xff] %v602_v43 }
 0x16c   : > { %626 = vst [vmem:[#allocation10 + $0x68] sm:$0xff] %v610_v60 }
 0x16d PF: > { %p1150_p10 = scmp.eq.s32.totalorder %s713_s12, 2  ;;  %s1001_s4 = smov [#allocation10]  }
 0x16e   : > { %s635_s5 = sshll.u32 %s1001_s4, 4  ;;  %s636_s5 = int_to_ptr.vmem [resolvable:$true] %s635_s5 }
 0x16f   : > { %s933_s6 = scalar_lea.vmem %s636_s5, 2048  ;;  %p940_p0 = scmp.lt.s32.totalorder %s636_s5, %s636_s5 }
 0x170   : > { %p934_p11 = scmp.ne.s32.totalorder %s636_s5, %s933_s6  ;;  %p941_p1 = scmp.lt.s32.totalorder %s933_s6, %s933_s6 }
 0x172   : > { %p935_p12 = pnand %p934_p11, %p1150_p10  ;;  %p942_p2 = por %p941_p1, %p940_p0 }
 0x174   : > { %p936_p13 = pneg %p935_p12 }
 0x176   : > { %p943_p5 = pnand %p942_p2, %p936_p13 }
 0x178   : > { %946 = shalt.err (!%p943_p5)
}
 0x179   : > { %s947_s12 = scalar_lea.hbm %s1187_s2, 2048 }
 0x17a   : > { %p948_p7 = scmp.ne.s32.totalorder %s1187_s2, %s947_s12  ;;  %p953_p6 = scmp.lt.u32.totalorder %s947_s12, %s1187_s2 }
 0x17c   : > { %p949_p8 = pnand %p948_p7, %p1150_p10 }
 0x17e   : > { %p950_p3 = pneg %p949_p8 }
 0x180   : > { %p955_p4 = pnand %p953_p6, %p950_p3 }
 0x182   : > { %958 = shalt.err (!%p955_p4)
}
 0x183   : > { %s1002_s22 = smov 128   ;;  %s1003_s23 = smov 8  }
 0x184   : > { %820 = dma.vmem_to_hbm [thread:$0]  (%p1150_p10), %s636_s5, 2048, %s1187_s2, [#allocation7], %s1002_s22, %s1002_s22, %s1003_s23  }
 0x185   : > { %980 = dma.done.wait (%p1150_p10), [#allocation7], 2048  }
 0x186   : > { %982 = vsyncadd (%p1150_p10), [#allocation7], 4294965248 }
 0x187 PF: > { %s15_s11 = sadd.s32 1, %s993_s11   ;;  %s1197_s9 = smov %s989_s10 }
 0x188   : > { %p12_p9 = scmp.ge.s32.totalorder %s15_s11, 5   ;;  %s1198_s10 = smov %s1200_s13 }
 0x18a   :  { %14 = sbr.rel (!%p12_p9) target bundleno = 4 (0x4), region = 81 }
 0x191   :  { %651 = vsyncpa [#allocation6], 1 }
 0x192   :  { %653 = vsyncpa [#allocation6 + $0x1], 1 }
 0x193   :  { %654 = vsyncpa [#allocation9], 1 }
 0x194   :  { %655 = vsyncpa [#allocation7], 1 }
 0x195   :  { %657 = vsyncpa [#allocation7 + $0x1], 1 }

</bundles_post_ra>
